<compile_context>
chip_gen: v7x
topology: tpu7x:2x2x1
jax: 0.10.0
libtpu: 0.0.40
codegen_flags: <defaults>
</compile_context>

<pallas_src>
import functools

import jax
import jax.numpy as jnp
import numpy as np
from jax.experimental import pallas as pl
from jax.experimental.pallas import tpu as pltpu


# -----------------------------------------------------------------------------
# Kernel
# -----------------------------------------------------------------------------
def _channel_gate_kernel(x_ref, w1_ref, b1_ref, w2_ref, b2_ref, g_ref, acc_ref,
                         *, inv_hw, hw, thw, masked):
    # x_ref : (TN, C, THW) slice of (N, C, H*W), stream dtype (bf16 or f32)
    # w1    : (C, Cr)   b1 : (1, Cr)     (1x1 conv: C -> C//16)
    # w2    : (Cr, C)   b2 : (1, C)      (1x1 conv: C//16 -> C)
    # g_ref : (TN, C)   channel gate output (lane-dense, C in lanes)
    # acc   : (TN, C)   f32 running spatial sum (VMEM scratch, resident over k)
    k = pl.program_id(1)

    @pl.when(k == 0)
    def _():
        acc_ref[...] = jnp.zeros_like(acc_ref)

    x = x_ref[...].astype(jnp.float32)                  # upcast stream dtype -> f32
    if masked:                                          # static: only if HW % THW != 0
        lane = jax.lax.broadcasted_iota(jnp.int32, x.shape, 2)
        x = jnp.where(k * thw + lane < hw, x, 0.0)      # zero the out-of-range tail
    acc_ref[...] += jnp.sum(x, axis=-1)                 # partial spatial sum (f32)

    @pl.when(k == pl.num_programs(1) - 1)
    def _():
        pooled = acc_ref[...] * inv_hw                  # AdaptiveAvgPool2d(1): (TN, C)
        h = jnp.dot(pooled, w1_ref[...],
                    preferred_element_type=jnp.float32) + b1_ref[...]
        h = jnp.maximum(h, 0.0)                         # ReLU
        g = jnp.dot(h, w2_ref[...],
                    preferred_element_type=jnp.float32) + b2_ref[...]
        g_ref[...] = jax.nn.sigmoid(g).astype(g_ref.dtype)


# -----------------------------------------------------------------------------
# Tile pickers
# -----------------------------------------------------------------------------
def _round_up(x, m):
    return ((x + m - 1) // m) * m


def _pick_batch_tile(n, per_image_bytes, budget):
    """Largest divisor of n whose x-block fits `budget`; prefer multiples of 8
    (sublane-aligned output blocks); fall back to TN=1, never TN=n over budget."""
    cap = max(1, min(n, budget // max(1, per_image_bytes)))
    if n >= 16:
        cap = min(cap, n // 2)          # keep >=2 steps on the parallel axis (v7x megacore)
    divs = [t for t in range(1, cap + 1) if n % t == 0]
    mult8 = [t for t in divs if t % 8 == 0]
    return mult8[-1] if mult8 else divs[-1]


def _pick_hw_tile(hw, c, itemsize, budget):
    """Used only when a single image exceeds the block budget (TN = 1).
    Returns a >=512-wide, 128-multiple THW; prefers an exact divisor of hw,
    otherwise the last block is tail-masked inside the kernel."""
    cap = max(512, (budget // max(1, c * itemsize)) // 128 * 128)
    cap = min(cap, _round_up(hw, 128))
    for t in range(cap, 511, -128):     # prefer an exact divisor (no tail mask)
        if hw % t == 0:
            return t
    return cap                          # tail-masked final block


# -----------------------------------------------------------------------------
# Wrapper
# -----------------------------------------------------------------------------
def channel_gate(x, params, *, stream_dtype=jnp.bfloat16,
                 hw_tile=None, batch_tile=None,
                 block_budget_bytes=8 * 1024 * 1024):
    """x: (N, C, H, W). Returns the gate as (N, C, 1, 1) float32, like the module.

    stream_dtype: dtype the feature map is streamed in (bf16 halves HBM read
    bytes; in a real pipeline the producer should already emit bf16 so the cast
    below is a no-op). Pass None to stream in x's native dtype.
    """
    N, C, H, W = x.shape
    HW = H * W
    Cr = params["w1"].shape[0]

    # 1x1 convs as dense matmuls (weights are tiny; transposes are negligible).
    w1 = params["w1"][:, :, 0, 0].T.astype(jnp.float32)   # (C, Cr)
    b1 = params["b1"].reshape(1, Cr).astype(jnp.float32)
    w2 = params["w2"][:, :, 0, 0].T.astype(jnp.float32)   # (Cr, C)
    b2 = params["b2"].reshape(1, C).astype(jnp.float32)

    sdt = x.dtype if stream_dtype is None else jnp.dtype(stream_dtype)
    x_stream = x if x.dtype == sdt else x.astype(sdt)      # pass-through if producer is bf16
    x_flat = x_stream.reshape(N, C, HW)                    # contiguous NCHW view
    itemsize = x_flat.dtype.itemsize

    # ---- tile selection: prefer full-HW contiguous rows, shrink TN to fit ----
    per_image = C * HW * itemsize
    if hw_tile is not None:
        THW = int(hw_tile)
        assert THW == HW or THW % 128 == 0, THW
        TN = (batch_tile if batch_tile is not None else
              _pick_batch_tile(N, C * min(THW, HW) * itemsize, block_budget_bytes))
    elif per_image <= block_budget_bytes:
        THW = HW                                           # one contiguous DMA per image
        TN = (batch_tile if batch_tile is not None else
              _pick_batch_tile(N, per_image, block_budget_bytes))
    else:
        THW = _pick_hw_tile(HW, C, itemsize, block_budget_bytes)
        TN = batch_tile if batch_tile is not None else 1
    assert N % TN == 0, (N, TN)

    K = pl.cdiv(HW, THW)
    masked = (HW % THW) != 0

    # ---- explicit VMEM limit: double-buffered x + out + scratch + weights ----
    x_blk = TN * C * THW * itemsize
    w_bytes = (2 * C * Cr + Cr + C) * 4
    vmem_limit = (2 * x_blk + 2 * TN * C * 4
                  + _round_up(TN, 8) * _round_up(C, 128) * 4
                  + 2 * w_bytes + (2 << 20))
    vmem_limit = int(min(max(vmem_limit, 24 << 20), 64 << 20))   # v7x: 64 MiB/TC ceiling

    cost = pl.CostEstimate(
        flops=int(N * C * HW + 4 * N * C * Cr + 4 * N * C),
        transcendentals=int(N * (C + Cr)),
        bytes_accessed=int(N * C * HW * itemsize + w_bytes + N * C * 4))

    kern = functools.partial(_channel_gate_kernel,
                             inv_hw=1.0 / HW, hw=HW, thw=THW, masked=masked)
    gate = pl.pallas_call(
        kern,
        out_shape=jax.ShapeDtypeStruct((N, C), jnp.float32),
        grid=(N // TN, K),                                 # reduction axis last
        in_specs=[
            pl.BlockSpec((TN, C, THW), lambda b, k: (b, 0, k)),
            pl.BlockSpec((C, Cr), lambda b, k: (0, 0)),
            pl.BlockSpec((1, Cr), lambda b, k: (0, 0)),
            pl.BlockSpec((Cr, C), lambda b, k: (0, 0)),
            pl.BlockSpec((1, C), lambda b, k: (0, 0)),
        ],
        out_specs=pl.BlockSpec((TN, C), lambda b, k: (b, 0)),
        scratch_shapes=[pltpu.VMEM((TN, C), jnp.float32)],
        compiler_params=pltpu.CompilerParams(
            dimension_semantics=("parallel", "arbitrary"),
            vmem_limit_bytes=vmem_limit),
        cost_estimate=cost,
    )(x_flat, w1, b1, w2, b2)
    return gate.reshape(N, C, 1, 1)


# -----------------------------------------------------------------------------
# Deterministic parameter setup (Conv2d weight layouts) + pure-JAX reference
# -----------------------------------------------------------------------------
def init_channel_gate_params(key, C):
    Cr = C // 16
    ks = jax.random.split(key, 4)
    nrm = lambda k, s: 0.1 * jax.random.normal(k, s, jnp.float32)
    return {
        "w1": nrm(ks[0], (Cr, C, 1, 1)),   # Conv2d(C, C//16, 1).weight
        "b1": nrm(ks[1], (Cr,)),
        "w2": nrm(ks[2], (C, Cr, 1, 1)),   # Conv2d(C//16, C, 1).weight
        "b2": nrm(ks[3], (C,)),
    }


def ref_channel_gate(x, p):
    pooled = jnp.mean(x.astype(jnp.float32), axis=(2, 3))                # (N, C)
    h = jax.nn.relu(pooled @ p["w1"][:, :, 0, 0].T + p["b1"])
    g = jax.nn.sigmoid(h @ p["w2"][:, :, 0, 0].T + p["b2"])
    return g[:, :, None, None]


# -----------------------------------------------------------------------------
if __name__ == "__main__":
    jax.config.update("jax_default_matmul_precision", "highest")

    key = jax.random.PRNGKey(0)
    kx1, kx2, kp1, kp2 = jax.random.split(key, 4)

    # Case 1: default path — bf16 stream, full-HW contiguous blocks, single-step k.
    x1 = jax.random.normal(kx1, (2, 32, 16, 16), jnp.float32)
    p1 = init_channel_gate_params(kp1, 32)
    g1 = jax.block_until_ready(channel_gate(x1, p1))
    ref1 = ref_channel_gate(x1.astype(jnp.bfloat16), p1)     # same bf16-cast input
    np.testing.assert_allclose(np.asarray(g1), np.asarray(ref1), rtol=2e-3, atol=2e-4)

    # Case 2: f32 stream with forced hw_tile=128 -> exercises the 2-step
    # accumulated reduction (exact division, no masking).
    g2 = jax.block_until_ready(
        channel_gate(x1, p1, stream_dtype=jnp.float32, hw_tile=128))
    np.testing.assert_allclose(np.asarray(g2),
                               np.asarray(ref_channel_gate(x1, p1)),
                               rtol=1e-4, atol=1e-5)

    # Case 3: non-square spatial map (HW = 240) with hw_tile=128 -> exercises the
    # tail-masked final reduction block.
    x2 = jax.random.normal(kx2, (3, 48, 12, 20), jnp.float32)
    p2 = init_channel_gate_params(kp2, 48)
    g3 = jax.block_until_ready(
        channel_gate(x2, p2, stream_dtype=jnp.float32, hw_tile=128))
    np.testing.assert_allclose(np.asarray(g3),
                               np.asarray(ref_channel_gate(x2, p2)),
                               rtol=1e-4, atol=1e-5)

    print("KERNEL_OK")
</pallas_src>

<mosaic_0001>
module attributes {stable_mosaic.version = 11 : i64} {
  func.func @_channel_gate_kernel(%arg0: i32, %arg1: i32, %arg2: memref<2x32x256xbf16, #tpu.memory_space<vmem>>, %arg3: memref<32x2xf32, #tpu.memory_space<vmem>>, %arg4: memref<1x2xf32, #tpu.memory_space<vmem>>, %arg5: memref<2x32xf32, #tpu.memory_space<vmem>>, %arg6: memref<1x32xf32, #tpu.memory_space<vmem>>, %arg7: memref<2x32xf32, #tpu.memory_space<vmem>>, %arg8: memref<2x32xf32, #tpu.memory_space<vmem>>) attributes {dimension_semantics = [#tpu.dimension_semantics<parallel>, #tpu.dimension_semantics<arbitrary>], iteration_bounds = array<i64: 1, 1>, scalar_prefetch = 0 : i64, scratch_operands = 1 : i64, tpu.core_type = #tpu.core_type<tc>, window_params = [{transform_indices = @transform_0, window_bounds = array<i64: 2, 32, 256>}, {pipeline_mode = #tpu.pipeline_mode<synchronous>, transform_indices = @transform_1, window_bounds = array<i64: 32, 2>}, {pipeline_mode = #tpu.pipeline_mode<synchronous>, transform_indices = @transform_2, window_bounds = array<i64: 1, 2>}, {pipeline_mode = #tpu.pipeline_mode<synchronous>, transform_indices = @transform_3, window_bounds = array<i64: 2, 32>}, {pipeline_mode = #tpu.pipeline_mode<synchronous>, transform_indices = @transform_4, window_bounds = array<i64: 1, 32>}, {transform_indices = @transform_5, window_bounds = array<i64: 2, 32>}]} {
    %c0_i32 = arith.constant 0 : i32
    %0 = arith.cmpi eq, %arg1, %c0_i32 : i32
    %1 = arith.extui %0 : i1 to i32
    %c0_i32_0 = arith.constant 0 : i32
    %2 = arith.cmpi ne, %1, %c0_i32_0 : i32
    scf.if %2 {
      %cst_9 = arith.constant 0.000000e+00 : f32
      %12 = vector.broadcast %cst_9 : f32 to vector<2x32xf32>
      %c0_10 = arith.constant 0 : index
      %c0_11 = arith.constant 0 : index
      %13 = vector.load %arg8[%c0_10, %c0_11] : memref<2x32xf32, #tpu.memory_space<vmem>>, vector<2x32xf32>
      tpu.vector_store %arg8[%c0_10, %c0_11], %12 {strides = array<i32>} : memref<2x32xf32, #tpu.memory_space<vmem>>, vector<2x32xf32>,
    } else {
    }
    %c0 = arith.constant 0 : index
    %c0_1 = arith.constant 0 : index
    %c0_2 = arith.constant 0 : index
    %3 = vector.load %arg2[%c0, %c0_1, %c0_2] : memref<2x32x256xbf16, #tpu.memory_space<vmem>>, vector<2x32x256xbf16>
    %4 = arith.extf %3 : vector<2x32x256xbf16> to vector<2x32x256xf32>
    %c0_3 = arith.constant 0 : index
    %c0_4 = arith.constant 0 : index
    %5 = vector.load %arg8[%c0_3, %c0_4] : memref<2x32xf32, #tpu.memory_space<vmem>>, vector<2x32xf32>
    %cst = arith.constant dense<0.000000e+00> : vector<2x32xf32>
    %6 = vector.multi_reduction <add>, %4, %cst [2] : vector<2x32x256xf32> to vector<2x32xf32>
    %7 = arith.addf %5, %6 : vector<2x32xf32>
    %c0_5 = arith.constant 0 : index
    %c0_6 = arith.constant 0 : index
    %8 = vector.load %arg8[%c0_5, %c0_6] : memref<2x32xf32, #tpu.memory_space<vmem>>, vector<2x32xf32>
    tpu.vector_store %arg8[%c0_5, %c0_6], %7 {strides = array<i32>} : memref<2x32xf32, #tpu.memory_space<vmem>>, vector<2x32xf32>,
    %c0_i32_7 = arith.constant 0 : i32
    %9 = arith.cmpi eq, %arg1, %c0_i32_7 : i32
    %10 = arith.extui %9 : i1 to i32
    %c0_i32_8 = arith.constant 0 : i32
    %11 = arith.cmpi ne, %10, %c0_i32_8 : i32
    scf.if %11 {
      %c0_9 = arith.constant 0 : index
      %c0_10 = arith.constant 0 : index
      %12 = vector.load %arg8[%c0_9, %c0_10] : memref<2x32xf32, #tpu.memory_space<vmem>>, vector<2x32xf32>
      %cst_11 = arith.constant 3.906250e-03 : f32
      %13 = vector.broadcast %cst_11 : f32 to vector<2x32xf32>
      %14 = arith.mulf %12, %13 : vector<2x32xf32>
      %c0_12 = arith.constant 0 : index
      %c0_13 = arith.constant 0 : index
      %15 = vector.load %arg3[%c0_12, %c0_13] : memref<32x2xf32, #tpu.memory_space<vmem>>, vector<32x2xf32>
      %cst_14 = arith.constant dense<0.000000e+00> : vector<2x2xf32>
      %16 = tpu.matmul %14, %15, %cst_14 {dimension_numbers = #tpu.dot_dimension_numbers<[1], [0], [0], [1], [0, 0, 1, 1], [], []>, precision = #tpu.contract_precision<fp32>} : vector<2x32xf32>, vector<32x2xf32>, vector<2x2xf32> -> vector<2x2xf32>
      %c0_15 = arith.constant 0 : index
      %c0_16 = arith.constant 0 : index
      %17 = vector.load %arg4[%c0_15, %c0_16] : memref<1x2xf32, #tpu.memory_space<vmem>>, vector<1x2xf32>
      %18 = vector.broadcast %17 : vector<1x2xf32> to vector<2x2xf32>
      %19 = arith.addf %16, %18 : vector<2x2xf32>
      %cst_17 = arith.constant 0.000000e+00 : f32
      %20 = vector.broadcast %cst_17 : f32 to vector<2x2xf32>
      %21 = arith.maximumf %19, %20 : vector<2x2xf32>
      %c0_18 = arith.constant 0 : index
      %c0_19 = arith.constant 0 : index
      %22 = vector.load %arg5[%c0_18, %c0_19] : memref<2x32xf32, #tpu.memory_space<vmem>>, vector<2x32xf32>
      %cst_20 = arith.constant dense<0.000000e+00> : vector<2x32xf32>
      %23 = tpu.matmul %21, %22, %cst_20 {dimension_numbers = #tpu.dot_dimension_numbers<[1], [0], [0], [1], [0, 0, 1, 1], [], []>, precision = #tpu.contract_precision<fp32>} : vector<2x2xf32>, vector<2x32xf32>, vector<2x32xf32> -> vector<2x32xf32>
      %c0_21 = arith.constant 0 : index
      %c0_22 = arith.constant 0 : index
      %24 = vector.load %arg6[%c0_21, %c0_22] : memref<1x32xf32, #tpu.memory_space<vmem>>, vector<1x32xf32>
      %25 = vector.broadcast %24 : vector<1x32xf32> to vector<2x32xf32>
      %26 = arith.addf %23, %25 : vector<2x32xf32>
      %27 = arith.negf %26 : vector<2x32xf32>
      %28 = math.exp %27 : vector<2x32xf32>
      %cst_23 = arith.constant 1.000000e+00 : f32
      %29 = vector.broadcast %cst_23 : f32 to vector<2x32xf32>
      %30 = arith.addf %29, %28 : vector<2x32xf32>
      %31 = arith.divf %29, %30 : vector<2x32xf32>
      %c0_24 = arith.constant 0 : index
      %c0_25 = arith.constant 0 : index
      %32 = vector.load %arg7[%c0_24, %c0_25] : memref<2x32xf32, #tpu.memory_space<vmem>>, vector<2x32xf32>
      tpu.vector_store %arg7[%c0_24, %c0_25], %31 {strides = array<i32>} : memref<2x32xf32, #tpu.memory_space<vmem>>, vector<2x32xf32>,
    } else {
    }
    return
  }
  func.func @transform_0(%arg0: i32, %arg1: i32) -> (i32, i32, i32) {
    %c0_i32 = arith.constant 0 : i32
    %c0_i32_0 = arith.constant 0 : i32
    return %arg0, %c0_i32, %arg1 : i32, i32, i32
  }
  func.func @transform_1(%arg0: i32, %arg1: i32) -> (i32, i32) {
    %c0_i32 = arith.constant 0 : i32
    %c0_i32_0 = arith.constant 0 : i32
    %c0_i32_1 = arith.constant 0 : i32
    return %c0_i32, %c0_i32_0 : i32, i32
  }
  func.func @transform_2(%arg0: i32, %arg1: i32) -> (i32, i32) {
    %c0_i32 = arith.constant 0 : i32
    %c0_i32_0 = arith.constant 0 : i32
    %c0_i32_1 = arith.constant 0 : i32
    return %c0_i32, %c0_i32_0 : i32, i32
  }
  func.func @transform_3(%arg0: i32, %arg1: i32) -> (i32, i32) {
    %c0_i32 = arith.constant 0 : i32
    %c0_i32_0 = arith.constant 0 : i32
    %c0_i32_1 = arith.constant 0 : i32
    return %c0_i32, %c0_i32_0 : i32, i32
  }
  func.func @transform_4(%arg0: i32, %arg1: i32) -> (i32, i32) {
    %c0_i32 = arith.constant 0 : i32
    %c0_i32_0 = arith.constant 0 : i32
    %c0_i32_1 = arith.constant 0 : i32
    return %c0_i32, %c0_i32_0 : i32, i32
  }
  func.func @transform_5(%arg0: i32, %arg1: i32) -> (i32, i32) {
    %c0_i32 = arith.constant 0 : i32
    %c0_i32_0 = arith.constant 0 : i32
    return %arg0, %c0_i32 : i32, i32
  }
}

</mosaic_0001>

<bundles_post_ra>
// kernel: tpu_custom_call.1
= control target key start
LH: loop header
LB: loop body
LE: loop exit
PB: predicated region body
PF: predicated region fallthrough
CT: control target
= control target key end

     0   :  { %10 = vsyncpa [#allocation4], 0  ;;  %s1561_s0 = inlined_call_operand.hbm [shape: bf16[2,32,256], index: 0, kind: input, shape index: {}]   ;;  %s1562_s1 = inlined_call_operand.vmem [shape: f32[32,2], index: 1, kind: input, shape index: {}]   ;;  %s1563_s2 = inlined_call_operand.vmem [shape: f32[1,2], index: 2, kind: input, shape index: {}]   ;;  %s1564_s3 = inlined_call_operand.vmem [shape: f32[2,32], index: 3, kind: input, shape index: {}]   ;;  %s1565_s4 = inlined_call_operand.vmem [shape: f32[1,32], index: 4, kind: input, shape index: {}]   ;;  %s1566_s5 = inlined_call_operand.hbm [shape: f32[2,32], index: 5, kind: output, shape index: {}]  }
   0x1   :  { %11 = vsyncpa [#allocation5], 0  ;;  %s1397_s18 = smov [#allocation3]   ;;  %s1349_s22 = scalar_lea.hbm %s1561_s0, 1024 }
   0x2   :  { %s17_s19 = sshll.u32 %s1397_s18, 4  ;;  %p1350_p0 = scmp.ne.s32.totalorder %s1561_s0, %s1349_s22  ;;  %s18_s19 = int_to_ptr.vmem [resolvable:$true] %s17_s19 }
   0x3   :  { %p1353_p1 = scmp.lt.u32.totalorder %s1349_s22, %s1561_s0 }
   0x5   :  { %p1355_p2 = pnand %p1353_p1, %p1350_p0 }
   0x7   :  { %1358 = shalt.err (!%p1355_p2)
}
   0x8   :  { %s1359_s27 = scalar_lea.vmem %s18_s19, 1024  ;;  %p1364_p4 = scmp.lt.s32.totalorder %s18_s19, %s18_s19 }
   0x9   :  { %p1360_p3 = scmp.ne.s32.totalorder %s18_s19, %s1359_s27  ;;  %p1365_p5 = scmp.lt.s32.totalorder %s1359_s27, %s1359_s27 }
   0xb   :  { %p1366_p6 = por %p1365_p5, %p1364_p4 }
   0xd   :  { %p1367_p7 = pnand %p1366_p6, %p1360_p3 }
   0xf   :  { %1370 = shalt.err (!%p1367_p7)
}
  0x10   :  { %s1398_s28 = smov 128   ;;  %s1399_s29 = smov 8  }
  0x11   :  { %23 = dma.hbm_to_vmem [thread:$0]  %s1561_s0, 1024, %s18_s19, [#allocation4], %s1398_s28, %s1398_s28, %s1399_s29  }
  0x12   :  { %1393 = dma.done.wait [#allocation4], 1024  }
  0x13   :  { %1394 = vsyncadd [#allocation4], 4294966272  ;;  %v45_v0 = vld [vmem:[#allocation3 + $0x20] sm:$0xff]  ;;  %v46_v2 = vld [vmem:[#allocation3 + $0x28] sm:$0xff]  ;;  %vm39_vm0 = vcmask 254976   ;;  %v1400_v32 = vmov 0.0  }
  0x14   :  { %v41_v1 = vld [vmem:[#allocation3] sm:$0xff]  ;;  %v57_v3 = vunpack.c.l.bf16 %v45_v0  ;;  %v58_v4 = vunpack.c.h.bf16 %v45_v0  ;;  %v42_v7 = vld [vmem:[#allocation3 + $0x8] sm:$0xff]  ;;  %v47_v8 = vld [vmem:[#allocation3 + $0x30] sm:$0xff]  ;;  %v59_v9 = vunpack.c.l.bf16 %v46_v2  ;;  %v60_v10 = vunpack.c.h.bf16 %v46_v2  ;;  %40 = vst.msk [vmem:[#allocation2] sm:$0x3] %vm39_vm0, %v1400_v32  ;;  %s1403_s17 = smov [#allocation6]  }
  0x15   :  { %v49_v5 = vunpack.c.l.bf16 %v41_v1  ;;  %v50_v6 = vunpack.c.h.bf16 %v41_v1  ;;  %v51_v11 = vunpack.c.l.bf16 %v42_v7  ;;  %v52_v12 = vunpack.c.h.bf16 %v42_v7  ;;  %v43_v13 = vld [vmem:[#allocation3 + $0x10] sm:$0xff]  ;;  %v48_v22 = vld [vmem:[#allocation3 + $0x38] sm:$0xff]  ;;  %v156_v34 = vld [vmem:[%s1562_s1 + $0x8] sm:$0xff]  ;;  %s1131_s18 = sshll.u32 %s1403_s17, 4  ;;  %s1132_s18 = int_to_ptr.vmem [resolvable:$true] %s1131_s18 }
  0x16   :  { %v78_v14 = vadd.f32 %v58_v4, %v57_v3  ;;  %v61_v16 = vunpack.c.l.bf16 %v47_v8  ;;  %v62_v17 = vunpack.c.h.bf16 %v47_v8  ;;  %v81_v18 = vadd.f32 %v60_v10, %v59_v9  ;;  %v44_v23 = vld [vmem:[#allocation3 + $0x18] sm:$0xff]  ;;  %v157_v39 = vld [vmem:[%s1562_s1 + $0x10] sm:$0xff]  ;;  %s1371_s19 = scalar_lea.vmem %s1132_s18, 32  ;;  %p1376_p9 = scmp.lt.s32.totalorder %s1132_s18, %s1132_s18 }
  0x17   :  { %v66_v15 = vadd.f32 %v50_v6, %v49_v5  ;;  %v69_v19 = vadd.f32 %v52_v12, %v51_v11  ;;  %v53_v20 = vunpack.c.l.bf16 %v43_v13  ;;  %v54_v21 = vunpack.c.h.bf16 %v43_v13  ;;  %v155_v33 = vld [vmem:[%s1562_s1] sm:$0xff]  ;;  %v158_v40 = vld [vmem:[%s1562_s1 + $0x18] sm:$0xff]  ;;  %p1372_p8 = scmp.ne.s32.totalorder %s1132_s18, %s1371_s19  ;;  %p1377_p10 = scmp.lt.s32.totalorder %s1371_s19, %s1371_s19 }
  0x18   :  { %79 = vadd.xlane.f32.xlu1 %v78_v14  ;;  %v84_v24 = vadd.f32 %v62_v17, %v61_v16  ;;  %v63_v25 = vunpack.c.l.bf16 %v48_v22  ;;  %v64_v27 = vunpack.c.h.bf16 %v48_v22  ;;  %v55_v28 = vunpack.c.l.bf16 %v44_v23 }
  0x19   :  { %67 = vadd.xlane.f32.xlu0 %v66_v15  ;;  %v72_v26 = vadd.f32 %v54_v21, %v53_v20  ;;  %v56_v29 = vunpack.c.h.bf16 %v44_v23  ;;  %v171_v35 = vand.u32 4294901760, %v155_v33  ;;  %v174_v36 = vand.u32 4294901760, %v156_v34  ;;  %p1378_p11 = por %p1377_p10, %p1376_p9 }
  0x1a   :  { %v87_v30 = vadd.f32 %v64_v27, %v63_v25  ;;  %v177_v43 = vand.u32 4294901760, %v157_v39  ;;  %v180_v44 = vand.u32 4294901760, %v158_v40  ;;  %v1401_v48 = vmov 0.0|0.0  }
  0x1b   :  { %v75_v31 = vadd.f32 %v56_v29, %v55_v28  ;;  %v1454_v37 = vsub.f32 %v155_v33, %v171_v35  ;;  %v1456_v38 = vsub.f32 %v156_v34, %v174_v36  ;;  %1287 = vmatprep.subr.bf16.mxu0 %v1401_v48  ;;  %1281 = vmatprep.subr.bf16.mxu1 %v1401_v48  ;;  %vm1402_vm1 = vmmov 0   ;;  %v65_v33 = vld [vmem:[#allocation2] sm:$0x3]  ;;  %p1379_p12 = pnand %p1378_p11, %p1372_p8 }
  0x1c   :  { %82 = vadd.xlane.f32.xlu1 %v81_v18  ;;  %v1468_v47 = vsub.f32 %v157_v39, %v177_v43  ;;  %v1471_v49 = vsub.f32 %v158_v40, %v180_v44  ;;  %1204 = vmatprep.mubr.msk.f32.mxu0 %vm1402_vm1, %v1400_v32  ;;  %v1486_v61 = vpack.c.bf16 %v174_v36, %v171_v35  ;;  %v98_v2 = vlaneseq }
  0x1d   :  { %70 = vadd.xlane.f32.xlu0 %v69_v19  ;;  %v252_v41 = vand.u32 4294901760, %v1454_v37  ;;  %v259_v42 = vand.u32 4294901760, %v1456_v38  ;;  %1193 = vmatprep.mubr.msk.f32.mxu1 %vm1402_vm1, %v1400_v32  ;;  %v1294_v60 = vpack.c.bf16 %v1456_v38, %v1454_v37  ;;  %v1492_v63 = vpack.c.bf16 %v180_v44, %v177_v43 }
  0x1e   :  { %v266_v52 = vand.u32 4294901760, %v1468_v47  ;;  %v273_v53 = vand.u32 4294901760, %v1471_v49  ;;  %1283 = vmatpush3.bf16.msra.mxu1 %v1486_v61  ;;  %v1297_v62 = vpack.c.bf16 %v1471_v49, %v1468_v47  ;;  %v99_v3 = vand.u32 127, %v98_v2 }
  0x1f   :  { %v253_v45 = vsub.f32 %v1454_v37, %v252_v41  ;;  %v260_v46 = vsub.f32 %v1456_v38, %v259_v42  ;;  %1284 = vmatprep.subr.bf16.mxu1 %v1401_v48  ;;  %v1496_v0 = vpack.c.bf16 %v259_v42, %v252_v41  ;;  %v101_v8 = vshrl.u32 %v98_v2, 7 }
  0x20   :  { %85 = vadd.xlane.f32.xlu1 %v84_v24  ;;  %v267_v55 = vsub.f32 %v1468_v47, %v266_v52  ;;  %v274_v56 = vsub.f32 %v1471_v49, %v273_v53  ;;  %v1498_v1 = vpack.c.bf16 %v273_v53, %v266_v52  ;;  %v104_v6 = vadd.s32 4294967288, %v99_v3  ;;  %v1140_v52 = vld [vmem:[%s1563_s2] ss:$0 sm:$0xff] }
  0x21   :  { %73 = vadd.xlane.f32.xlu0 %v72_v26  ;;  %v254_v50 = vand.u32 4294901760, %v253_v45  ;;  %v261_v51 = vand.u32 4294901760, %v260_v46  ;;  %v111_v7 = vadd.s32 4294967280, %v99_v3  ;;  %v118_v12 = vadd.s32 4294967272, %v99_v3  ;;  %v656_v46 = vld [vmem:[%s1564_s3] sm:$0x3] }
  0x22   :  { %v268_v57 = vand.u32 4294901760, %v267_v55  ;;  %v275_v58 = vand.u32 4294901760, %v274_v56  ;;  %1286 = vmatpush3.bf16.msra.mxu1 %v1492_v63  ;;  %v107_v11 = vsub.s32 %v104_v6, %v101_v8  ;;  %v102_v14 = vsub.s32 %v99_v3, %v101_v8  ;;  %v1141_v3 = vld [vmem:[%s1565_s4] ss:$0 sm:$0xff] }
  0x23   :  { %v1288_v54 = vpack.c.bf16 %v261_v51, %v254_v50  ;;  %1251 = vmatprep.subr.mxu1 %v1400_v32  ;;  %v114_v13 = vsub.s32 %v111_v7, %v101_v8  ;;  %v121_v19 = vsub.s32 %v118_v12, %v101_v8  ;;  %vm109_vm2 = vcmask 130112  }
  0x24   :  { %88 = vadd.xlane.f32.xlu1 %v87_v30  ;;  %v1291_v59 = vpack.c.bf16 %v275_v58, %v268_v57  ;;  %vm116_vm3 = vcmask 195712   ;;  %vm123_vm4 = vcmask 261312   ;;  %vm144_vm5 = vcmask 1041409  }
  0x25   :  { %76 = vadd.xlane.f32.xlu0 %v75_v31  ;;  %1289 = vmatpush3.bf16.msra.mxu0 %v1288_v54  ;;  %vm166_vm6 = vcmask 261120   ;;  %vm668_vm7 = vcmask 1041408   ;;  %vm664_vm8 = vcmask 15360  }
  0x26   :  { %1290 = vmatprep.subr.bf16.mxu0 %v1401_v48  ;;  %v670_v47 = vsel %vm668_vm7, %v656_v46, 0 }
  0x27   :  { %v673_v49 = vand.u32 4294901760, %v670_v47 }
  0x29   :  { %1292 = vmatpush3.bf16.msra.mxu0 %v1291_v59  ;;  %v750_v56 = vsub.f32 %v670_v47, %v673_v49 }
  0x2a   :  { %1293 = vmatprep.subr.bf16.mxu0 %v1401_v48 }
  0x2b   :  { %v751_v59 = vand.u32 4294901760, %v750_v56 }
  0xa5   :  { %v80_v4 = vpop.xlane.xlu1 %79 }
  0xa6   :  { %v68_v5 = vpop.xlane.xlu0 %67  ;;  %v128_v22 = vrot.slane %v80_v4, %v102_v14 }
  0xa7   :  { %v103_v23 = vrot.slane %v68_v5, %v102_v14 }
  0xa9   :  { %v83_v9 = vpop.xlane.xlu1 %82 }
  0xaa   :  { %v71_v10 = vpop.xlane.xlu0 %70  ;;  %v132_v17 = vrot.slane %v83_v9, %v107_v11 }
  0xab   :  { %v108_v18 = vrot.slane %v71_v10, %v107_v11 }
  0xac   :  { %v133_v26 = vsel %vm109_vm2, %v132_v17, %v128_v22 }
  0xad   :  { %v86_v15 = vpop.xlane.xlu1 %85  ;;  %v110_v27 = vsel %vm109_vm2, %v108_v18, %v103_v23 }
  0xae   :  { %v74_v16 = vpop.xlane.xlu0 %73  ;;  %v137_v20 = vrot.slane %v86_v15, %v114_v13 }
  0xaf   :  { %v115_v21 = vrot.slane %v74_v16, %v114_v13 }
  0xb0   :  { %v138_v30 = vsel %vm116_vm3, %v137_v20, %v133_v26 }
  0xb1   :  { %v89_v24 = vpop.xlane.xlu1 %88  ;;  %v117_v31 = vsel %vm116_vm3, %v115_v21, %v110_v27 }
  0xb2   :  { %v77_v25 = vpop.xlane.xlu0 %76  ;;  %v142_v28 = vrot.slane %v89_v24, %v121_v19 }
  0xb3   :  { %v122_v29 = vrot.slane %v77_v25, %v121_v19 }
  0xb4   :  { %v143_v34 = vsel %vm123_vm4, %v142_v28, %v138_v30 }
  0xb5   :  { %v124_v35 = vsel %vm123_vm4, %v122_v29, %v117_v31 }
  0xb6   :  { %v145_v36 = vsel %vm144_vm5, %v143_v34, %v124_v35 }
  0xb7   :  { %v147_v37 = vadd.f32 %v145_v36, %v65_v33 }
  0xb9   :  { %149 = vst.msk [vmem:[#allocation2] sm:$0x3] %vm39_vm0, %v147_v37 }
  0xc0   :  { %v153_v38 = vld [vmem:[#allocation2] sm:$0x3] }
  0xc1   :  { %v154_v39 = vmul.f32 0.00390625, %v153_v38 }
  0xc3   :  { %v168_v40 = vsel %vm166_vm6, %v154_v39, 0 }
  0xc4   :  { %v239_v41 = vand.u32 4294901760, %v168_v40 }
  0xc6   :  { %1205 = vmatmul.mubr.f32.vlgmr.msra.gmra.mrb[0].mxu0 %v239_v41  ;;  %v240_v42 = vsub.f32 %v168_v40, %v239_v41 }
  0xc7   :  { %1295 = vmatpush3.bf16.msra.mxu0 %v1294_v60  ;;  %1215 = vmatprep.mubr.msk.f32.mxu0 %vm1402_vm1, %v1400_v32 }
  0xc8   :  { %1296 = vmatprep.subr.bf16.mxu0 %v1401_v48  ;;  %v241_v43 = vand.u32 4294901760, %v240_v42 }
  0xca   :  { %v242_v44 = vsub.f32 %v240_v42, %v241_v43 }
  0xcb   :  { %1298 = vmatpush3.bf16.msra.mxu0 %v1297_v62  ;;  %v752_v62 = vsub.f32 %v750_v56, %v751_v59 }
  0xcc   :  { %1299 = vmatprep.subr.bf16.mxu0 %v1401_v48  ;;  %v243_v45 = vand.u32 4294901760, %v242_v44 }
  0xce   :  { %1194 = vmatmul.mubr.f32.vlgmr.msra.gmra.mrb[0].mxu1 %v243_v45  ;;  %1216 = vmatmul.mubr.f32.vlgmr.msra.gmra.mrb[0].mxu0 %v240_v42 }
  0xcf   :  { %1301 = vmatpush3.bf16.msra.mxu0 %v1486_v61  ;;  %1226 = vmatprep.mubr.msk.f32.mxu0 %vm1402_vm1, %v1400_v32 }
  0xd0   :  { %1302 = vmatprep.subr.bf16.mxu0 %v1401_v48  ;;  %1253 = vmatprep.mubr.msk.f32.mxu1 %vm1402_vm1, %v1400_v32 }
  0xd1   :  { %1252 = vmatpush3.msra.mxu1 %v673_v49 }
  0xd2   :  { %1256 = vmatprep.subr.mxu1 %v1400_v32 }
  0xd3   :  { %1304 = vmatpush3.bf16.msra.mxu0 %v1492_v63 }
  0xd4   :  { %1305 = vmatprep.subr.bf16.mxu0 %v1401_v48 }
  0xd6   :  { %1227 = vmatmul.mubr.f32.vlgmr.msra.gmra.mrb[0].mxu0 %v241_v43 }
  0xd7   :  { %1307 = vmatpush3.bf16.msra.mxu0 %v1496_v0  ;;  %1237 = vmatprep.mubr.msk.f32.mxu0 %vm1402_vm1, %v1400_v32 }
  0xd8   :  { %1308 = vmatprep.subr.bf16.mxu0 %v1401_v48 }
  0xdb   :  { %1310 = vmatpush3.bf16.msra.mxu0 %v1498_v1  ;;  %v753_v1 = vand.u32 4294901760, %v752_v62 }
  0xdc   :  { %1311 = vmatprep.subr.bf16.mxu0 %v1401_v48 }
  0xde   :  { %1238 = vmatmul.mubr.f32.vlgmr.msra.gmra.mrb[0].mxu0 %v239_v41 }
  0xdf   :  { %1313 = vmatpush3.bf16.msra.mxu0 %v1486_v61  ;;  %1248 = vmatprep.mubr.msk.f32.mxu0 %vm1402_vm1, %v1400_v32 }
  0xe0   :  { %1314 = vmatprep.subr.bf16.mxu0 %v1401_v48 }
  0xe3   :  { %1316 = vmatpush3.bf16.msra.mxu0 %v1492_v63 }
  0xe6   :  { %1249 = vmatmul.mubr.f32.vlgmr.msra.gmra.mrb[0].mxu0 %v239_v41 }
 0x1a1   :  { %v245_v50 = vpop.f32.mrb[0].mxu1 }
 0x1a2   :  { %v1195_v51 = vpop.f32.mrb[1].mxu1  ;;  %v246_v48 = vadd.f32 %v1140_v52, %v245_v50 }
 0x1b9   :  { %v651_v53 = vpop.f32.mrb[0].mxu0 }
 0x1ba   :  { %v1318_v54 = vadd.f32 %v651_v53, %v246_v48  ;;  %v1250_v55 = vpop.f32.mrb[1].mxu0 }
 0x1bc   :  { %v655_v57 = vmax.f32 %v1318_v54, 0.0 }
 0x1be   :  { %v666_v58 = vsel %vm664_vm8, %v655_v57, 0 }
 0x1bf   :  { %v738_v60 = vand.u32 4294901760, %v666_v58 }
 0x1c1   :  { %v739_v61 = vsub.f32 %v666_v58, %v738_v60 }
 0x1c3   :  { %v740_v63 = vand.u32 4294901760, %v739_v61 }
 0x1c5   :  { %v741_v0 = vsub.f32 %v739_v61, %v740_v63 }
 0x1c7   :  { %v742_v2 = vand.u32 4294901760, %v741_v0 }
 0x1c9   :  { %1254 = vmatmul.mubr.f32.vlgmr.msra.gmra.mrb[2].mxu1 %v742_v2 }
 0x1ca   :  { %1257 = vmatpush3.msra.mxu1 %v753_v1  ;;  %1258 = vmatprep.mubr.msk.f32.mxu1 %vm1402_vm1, %v1400_v32 }
 0x1cb   :  { %1261 = vmatprep.subr.mxu1 %v1400_v32 }
 0x1d1   :  { %1259 = vmatmul.mubr.f32.vlgmr.msra.gmra.mrb[2].mxu1 %v738_v60 }
 0x1d2   :  { %1262 = vmatpush3.msra.mxu1 %v750_v56  ;;  %1263 = vmatprep.mubr.msk.f32.mxu1 %vm1402_vm1, %v1400_v32 }
 0x1d3   :  { %1266 = vmatprep.subr.mxu1 %v1400_v32 }
 0x1d9   :  { %1264 = vmatmul.mubr.f32.vlgmr.msra.gmra.mrb[2].mxu1 %v739_v61 }
 0x1da   :  { %1267 = vmatpush3.msra.mxu1 %v673_v49  ;;  %1268 = vmatprep.mubr.msk.f32.mxu1 %vm1402_vm1, %v1400_v32 }
 0x1db   :  { %1271 = vmatprep.subr.mxu1 %v1400_v32 }
 0x1e1   :  { %1269 = vmatmul.mubr.f32.vlgmr.msra.gmra.mrb[2].mxu1 %v740_v63 }
 0x1e2   :  { %1272 = vmatpush3.msra.mxu1 %v751_v59  ;;  %1273 = vmatprep.mubr.msk.f32.mxu1 %vm1402_vm1, %v1400_v32 }
 0x1e3   :  { %1276 = vmatprep.subr.mxu1 %v1400_v32 }
 0x1e9   :  { %1274 = vmatmul.mubr.f32.vlgmr.msra.gmra.mrb[2].mxu1 %v738_v60 }
 0x1ea   :  { %1277 = vmatpush3.msra.mxu1 %v673_v49  ;;  %1278 = vmatprep.mubr.msk.f32.mxu1 %vm1402_vm1, %v1400_v32 }
 0x1f1   :  { %1279 = vmatmul.mubr.f32.vlgmr.msra.gmra.mrb[2].mxu1 %v738_v60 }
 0x2c4   :  { %v1114_v4 = vpop.f32.mrb[2].mxu1 }
 0x2c5   :  { %v1319_v5 = vadd.f32 %v1141_v3, %v1114_v4  ;;  %v1280_v6 = vpop.f32.mrb[3].mxu1 }
 0x2c7   :  { %v1142_v7 = vmul.f32 -1.442695, %v1319_v5 }
 0x2c9   :  { %1345 = vpow2.f32 %v1142_v7 }
 0x2d3   :  { %v1346_v8 = vpop.eup %1345 }
 0x2d4   :  { %v1121_v9 = vadd.f32 1.0, %v1346_v8 }
 0x2d6   :  { %1347 = vrcp.f32 %v1121_v9 }
 0x2e0   :  { %v1348_v10 = vpop.eup %1347 }
 0x2e1   :  { %1124 = vst.msk [vmem:[#allocation6] sm:$0x3] %vm39_vm0, %v1348_v10 }
 0x2e2   :  { %1382 = shalt.err (!%p1379_p12)
}
 0x2e3   :  { %s1383_s21 = scalar_lea.hbm %s1566_s5, 32 }
 0x2e4   :  { %p1384_p13 = scmp.ne.s32.totalorder %s1566_s5, %s1383_s21  ;;  %p1387_p0 = scmp.lt.u32.totalorder %s1383_s21, %s1566_s5 }
 0x2e6   :  { %p1389_p1 = pnand %p1387_p0, %p1384_p13 }
 0x2e8   :  { %1392 = shalt.err (!%p1389_p1)
}
 0x2e9   :  { %1134 = dma.vmem_to_hbm [thread:$0]  %s1132_s18, 32, %s1566_s5, [#allocation5]  }
 0x2ea   :  { %1395 = dma.done.wait [#allocation5], 32  }
 0x2eb   :  { %1396 = vsyncadd [#allocation5], 4294967264 }
 0x2ec   :  { %1138 = vsyncpa [#allocation4], 1 }
 0x2ed   :  { %1139 = vsyncpa [#allocation5], 1 }

</bundles_post_ra>
